<compile_context>
chip_gen: v5e
topology: v5e:2x2
jax: 0.10.0
libtpu: 0.0.40
codegen_flags: <defaults>
</compile_context>

<pallas_src>
from functools import partial

import jax
import jax.numpy as jnp
from jax.experimental import pallas as pl
from jax.experimental.pallas import tpu as pltpu


# ----------------------------------------------------------------------------- kernel
def _fused_unet_conv_kernel(x_ref, t1_ref, t2_ref, s1_ref, b1_ref, s2_ref,
                            b2_ref, mask_ref, o_ref, xpad, acc,
                            *, K, H, B, Hb, p):
    """One grid step = one group of B images as a single (Rpad, lane) row slab.

    x_ref : (B, H, W*Cin)       bf16 activations, lane axis = W*Cin
    t1_ref: (K, W*Cin,  W*Cmid) bf16 block-Toeplitz conv1 weights (kw + W-pad folded in)
    t2_ref: (K, W*Cmid, W*Cout) bf16 block-Toeplitz conv2 weights
    s*/b* : (1, W*C)            f32 folded BatchNorm scale / shift (tiled over W)
    mask  : (Rpad, 1)           f32 1.0 on image rows, 0.0 on separator rows
    o_ref : (B, H, W*Cout)      f32 output
    xpad  : (Rpad, W*Cin)       bf16 VMEM scratch: images stacked with zero separators
    acc   : (Rpad, W*Cout)      f32 VMEM accumulator (W*Cmid == W*Cout for UnetConv)
    """
    sep = Hb - H
    n_rows = acc.shape[0]                       # Rpad = (B-1)*Hb + H

    # ---- build the padded bf16 slab: aligned data stores, zero only separator rows.
    for b in range(B):
        xpad[b * Hb:b * Hb + H, :] = x_ref[b]
    for b in range(B - 1):
        xpad[b * Hb + H:(b + 1) * Hb, :] = jnp.zeros((sep, xpad.shape[1]),
                                                     dtype=xpad.dtype)
    xv = xpad[...]                               # single aligned bf16 load, no casts

    def conv(inp, t_ref):
        # acc[i] = sum_kh inp[i - p + kh] @ t[kh].  Full-slab aligned matmuls; the
        # +/-row shifts are applied to the f32 results (32-bit sublane shifts), and
        # rows shifted in from outside the slab are the implicit zero H-padding.
        acc[...] = jnp.dot(inp, t_ref[p], preferred_element_type=jnp.float32)
        for kh in range(K):
            if kh == p:
                continue
            tap = jnp.dot(inp, t_ref[kh], preferred_element_type=jnp.float32)
            d = p - kh
            if d > 0:
                acc[d:n_rows, :] += tap[0:n_rows - d, :]
            else:
                acc[0:n_rows + d, :] += tap[-d:n_rows, :]

    # ---- conv1 + BN1 + ReLU: intermediate stays in VMEM/vregs, single bf16 cast.
    conv(xv, t1_ref)
    y = jnp.maximum(acc[...] * s1_ref[...] + b1_ref[...], 0.0)
    y = (y * mask_ref[...]).astype(jnp.bfloat16)   # re-zero separator rows for conv2

    # ---- conv2 + BN2 + ReLU on the VMEM-resident intermediate (no HBM round trip).
    conv(y, t2_ref)
    z = jnp.maximum(acc[...] * s2_ref[...] + b2_ref[...], 0.0)

    # ---- per-image, sublane-aligned, lane-dense output stores.
    # (kept f32 to match the PyTorch module; switch o_ref dtype to bf16 if the
    #  consumer tolerates it — halves output HBM writeback, mostly matters on v5e)
    for b in range(B):
        o_ref[b] = z[b * Hb:b * Hb + H, :].astype(o_ref.dtype)


def _pick_group_size(n, h, target_rows=256):
    """Images per grid step: enough slab rows to fill the MXU; must divide N."""
    b = min(n, max(1, -(-target_rows // h)))
    while n % b:
        b -= 1
    return b


def _unet_conv_pallas(x, t1, t2, s1, b1, s2, b2, mask, *, group, hb, k, pad):
    """x: (N, H, W*Cin) bf16. Returns (N, H, W*Cout) f32."""
    N, H, WCin = x.shape
    WCmid = t1.shape[2]
    WCout = t2.shape[2]
    assert WCmid == WCout, "UnetConv: conv2 is out_size -> out_size"
    n_rows = (group - 1) * hb + H
    kern = partial(_fused_unet_conv_kernel, K=k, H=H, B=group, Hb=hb, p=pad)
    return pl.pallas_call(
        kern,
        out_shape=jax.ShapeDtypeStruct((N, H, WCout), jnp.float32),
        grid_spec=pltpu.PrefetchScalarGridSpec(
            num_scalar_prefetch=0,
            grid=(N // group,),
            in_specs=[
                pl.BlockSpec((group, H, WCin), lambda g: (g, 0, 0)),
                # grid-invariant weights / BN affine / row mask: constant index_map
                # -> fetched once, revisited across steps.
                pl.BlockSpec((k, WCin, WCmid), lambda g: (0, 0, 0)),
                pl.BlockSpec((k, WCmid, WCout), lambda g: (0, 0, 0)),
                pl.BlockSpec((1, WCmid), lambda g: (0, 0)),
                pl.BlockSpec((1, WCmid), lambda g: (0, 0)),
                pl.BlockSpec((1, WCout), lambda g: (0, 0)),
                pl.BlockSpec((1, WCout), lambda g: (0, 0)),
                pl.BlockSpec((n_rows, 1), lambda g: (0, 0)),
            ],
            out_specs=pl.BlockSpec((group, H, WCout), lambda g: (g, 0, 0)),
            scratch_shapes=[
                pltpu.VMEM((n_rows, WCin), jnp.bfloat16),
                pltpu.VMEM((n_rows, WCout), jnp.float32),
            ],
        ),
        compiler_params=pltpu.CompilerParams(
            dimension_semantics=("parallel",),     # independent image groups
            vmem_limit_bytes=32 * 1024 * 1024,     # actual footprint << 1 MiB here
        ),
    )(x, t1, t2, s1, b1, s2, b2, mask)


# ----------------------------------------------------------------------------- params
def _fold_bn(bias, gamma, beta, mean, var, eps=1e-5):
    s = gamma / jnp.sqrt(var + eps)
    t = (bias - mean) * s + beta
    return s, t


def _block_toeplitz(w, width):
    """(K, K, Cin, Cout) conv weight -> (K, width*Cin, width*Cout) block-Toeplitz.

    T[kh, wi*Cin + ci, wo*Cout + co] = w[kh, wi-wo+pad, ci, co] for valid taps,
    0 otherwise (this encodes both the kw taps and the W zero padding)."""
    K, _, Cin, Cout = w.shape
    pad = (K - 1) // 2
    T = jnp.zeros((K, width * Cin, width * Cout), jnp.float32)
    for kw in range(K):
        for wo in range(width):
            wi = wo + kw - pad
            if 0 <= wi < width:
                T = T.at[:, wi * Cin:(wi + 1) * Cin,
                         wo * Cout:(wo + 1) * Cout].set(w[:, kw])
    return T


def init_unet_conv_params(key, in_size, out_size, k=3):
    """Deterministic synthetic parameters matching UnetConv's __init__ shapes."""
    ks = jax.random.split(key, 12)

    def _w(kk, cout, cin):
        # PyTorch conv weight (Cout, Cin, KH, KW) -> (KH, KW, Cin, Cout)
        w = jax.random.normal(kk, (cout, cin, k, k), jnp.float32) * 0.1
        return jnp.transpose(w, (2, 3, 1, 0))

    p = {}
    p["w1"] = _w(ks[0], out_size, in_size)
    p["b1"] = 0.1 * jax.random.normal(ks[1], (out_size,), jnp.float32)
    p["g1"] = 1.0 + 0.1 * jax.random.normal(ks[2], (out_size,), jnp.float32)
    p["be1"] = 0.1 * jax.random.normal(ks[3], (out_size,), jnp.float32)
    p["m1"] = 0.1 * jax.random.normal(ks[4], (out_size,), jnp.float32)
    p["v1"] = 1.0 + 0.1 * jax.nn.softplus(jax.random.normal(ks[5], (out_size,), jnp.float32))
    p["w2"] = _w(ks[6], out_size, out_size)
    p["b2"] = 0.1 * jax.random.normal(ks[7], (out_size,), jnp.float32)
    p["g2"] = 1.0 + 0.1 * jax.random.normal(ks[8], (out_size,), jnp.float32)
    p["be2"] = 0.1 * jax.random.normal(ks[9], (out_size,), jnp.float32)
    p["m2"] = 0.1 * jax.random.normal(ks[10], (out_size,), jnp.float32)
    p["v2"] = 1.0 + 0.1 * jax.nn.softplus(jax.random.normal(ks[11], (out_size,), jnp.float32))
    return p


def prepare_pallas_params(p, width):
    """Fold BN, build block-Toeplitz weights (bf16) and W-tiled BN affine (f32)."""
    s1, t1 = _fold_bn(p["b1"], p["g1"], p["be1"], p["m1"], p["v1"])
    s2, t2 = _fold_bn(p["b2"], p["g2"], p["be2"], p["m2"], p["v2"])
    cmid = p["w1"].shape[-1]
    cout = p["w2"].shape[-1]
    return {
        "T1": _block_toeplitz(p["w1"], width).astype(jnp.bfloat16),
        "T2": _block_toeplitz(p["w2"], width).astype(jnp.bfloat16),
        "s1": jnp.tile(s1, width).reshape(1, width * cmid).astype(jnp.float32),
        "t1": jnp.tile(t1, width).reshape(1, width * cmid).astype(jnp.float32),
        "s2": jnp.tile(s2, width).reshape(1, width * cout).astype(jnp.float32),
        "t2": jnp.tile(t2, width).reshape(1, width * cout).astype(jnp.float32),
    }


# ----------------------------------------------------------------------------- forward
@jax.jit
def unet_conv_forward(x_nchw, pack):
    """UnetConv.forward: conv1(conv+bn+relu) -> conv2(conv+bn+relu). NCHW in/out."""
    N, Cin, H, W = x_nchw.shape
    K = pack["T1"].shape[0]
    p = (K - 1) // 2
    Cout = pack["T2"].shape[2] // W

    # Static slab layout: B images per step, separator rows keep every block start
    # (and hence every scratch access) sublane-aligned while providing >=2*pad zeros
    # between images; the slab's top/bottom padding is implicit in the tap shifts.
    B = _pick_group_size(N, H)
    Hb = -(-(H + 2 * p) // 8) * 8
    Rpad = (B - 1) * Hb + H
    mask = ((jnp.arange(Rpad) % Hb) < H).astype(jnp.float32).reshape(Rpad, 1)

    # NCHW -> lane-dense (N, H, W*Cin) bf16 slabs at the pallas boundary.
    x = jnp.transpose(x_nchw, (0, 2, 3, 1)).reshape(N, H, W * Cin).astype(jnp.bfloat16)
    z = _unet_conv_pallas(x, pack["T1"], pack["T2"], pack["s1"], pack["t1"],
                          pack["s2"], pack["t2"], mask,
                          group=B, hb=Hb, k=K, pad=p)
    return jnp.transpose(z.reshape(N, H, W, Cout), (0, 3, 1, 2))


def _reference_forward(x_nchw, p):
    """Pure-JAX reference (lax.conv) with the same bf16 cast points as the kernel."""
    s1, t1 = _fold_bn(p["b1"], p["g1"], p["be1"], p["m1"], p["v1"])
    s2, t2 = _fold_bn(p["b2"], p["g2"], p["be2"], p["m2"], p["v2"])
    bf = lambda a: a.astype(jnp.bfloat16).astype(jnp.float32)

    def block(x, w, s, t):
        y = jax.lax.conv_general_dilated(
            x, bf(w), window_strides=(1, 1), padding=((1, 1), (1, 1)),
            dimension_numbers=("NHWC", "HWIO", "NHWC"))
        return jnp.maximum(y * s + t, 0.0)

    x = bf(jnp.transpose(x_nchw, (0, 2, 3, 1)))
    y = block(x, p["w1"], s1, t1)
    z = block(bf(y), p["w2"], s2, t2)      # kernel feeds conv2 a bf16 intermediate
    return jnp.transpose(z, (0, 3, 1, 2))


if __name__ == "__main__":
    key = jax.random.PRNGKey(0)
    kx, kp = jax.random.split(key)

    N, Cin, H, W = 2, 4, 16, 16
    Cout = 8

    x = jax.random.normal(kx, (N, Cin, H, W), jnp.float32)
    raw_params = init_unet_conv_params(kp, Cin, Cout)
    pack = prepare_pallas_params(raw_params, W)

    out = jax.block_until_ready(unet_conv_forward(x, pack))

    ref = _reference_forward(x, raw_params)
    if not jnp.allclose(out, ref, atol=2e-3, rtol=2e-3):
        err = float(jnp.max(jnp.abs(out - ref)))
        raise AssertionError(f"Pallas UnetConv mismatch vs JAX reference (max abs err {err})")

    print("KERNEL_OK")
</pallas_src>

<mosaic_0001>
module attributes {stable_mosaic.version = 11 : i64} {
  func.func @_fused_unet_conv_kernel(%arg0: i32, %arg1: memref<2x16x64xbf16, #tpu.memory_space<vmem>>, %arg2: memref<3x64x128xbf16, #tpu.memory_space<vmem>>, %arg3: memref<3x128x128xbf16, #tpu.memory_space<vmem>>, %arg4: memref<1x128xf32, #tpu.memory_space<vmem>>, %arg5: memref<1x128xf32, #tpu.memory_space<vmem>>, %arg6: memref<1x128xf32, #tpu.memory_space<vmem>>, %arg7: memref<1x128xf32, #tpu.memory_space<vmem>>, %arg8: memref<40x1xf32, #tpu.memory_space<vmem>>, %arg9: memref<2x16x128xf32, #tpu.memory_space<vmem>>, %arg10: memref<40x64xbf16, #tpu.memory_space<vmem>>, %arg11: memref<40x128xf32, #tpu.memory_space<vmem>>) attributes {dimension_semantics = [#tpu.dimension_semantics<parallel>], iteration_bounds = array<i64: 1>, scalar_prefetch = 0 : i64, scratch_operands = 2 : i64, tpu.core_type = #tpu.core_type<tc>, window_params = [{transform_indices = @transform_0, window_bounds = array<i64: 2, 16, 64>}, {pipeline_mode = #tpu.pipeline_mode<synchronous>, transform_indices = @transform_1, window_bounds = array<i64: 3, 64, 128>}, {pipeline_mode = #tpu.pipeline_mode<synchronous>, transform_indices = @transform_2, window_bounds = array<i64: 3, 128, 128>}, {pipeline_mode = #tpu.pipeline_mode<synchronous>, transform_indices = @transform_3, window_bounds = array<i64: 1, 128>}, {pipeline_mode = #tpu.pipeline_mode<synchronous>, transform_indices = @transform_4, window_bounds = array<i64: 1, 128>}, {pipeline_mode = #tpu.pipeline_mode<synchronous>, transform_indices = @transform_5, window_bounds = array<i64: 1, 128>}, {pipeline_mode = #tpu.pipeline_mode<synchronous>, transform_indices = @transform_6, window_bounds = array<i64: 1, 128>}, {pipeline_mode = #tpu.pipeline_mode<synchronous>, transform_indices = @transform_7, window_bounds = array<i64: 40, 1>}, {transform_indices = @transform_8, window_bounds = array<i64: 2, 16, 128>}]} {
    %c0 = arith.constant 0 : index
    %c0_0 = arith.constant 0 : index
    %c0_1 = arith.constant 0 : index
    %0 = vector.load %arg1[%c0, %c0_0, %c0_1] : memref<2x16x64xbf16, #tpu.memory_space<vmem>>, vector<1x16x64xbf16>
    %1 = vector.shape_cast %0 : vector<1x16x64xbf16> to vector<16x64xbf16>
    %c0_2 = arith.constant 0 : index
    %c0_3 = arith.constant 0 : index
    %2 = vector.load %arg10[%c0_2, %c0_3] : memref<40x64xbf16, #tpu.memory_space<vmem>>, vector<16x64xbf16>
    tpu.vector_store %arg10[%c0_2, %c0_3], %1 {strides = array<i32>} : memref<40x64xbf16, #tpu.memory_space<vmem>>, vector<16x64xbf16>,
    %c1 = arith.constant 1 : index
    %c0_4 = arith.constant 0 : index
    %c0_5 = arith.constant 0 : index
    %3 = vector.load %arg1[%c1, %c0_4, %c0_5] : memref<2x16x64xbf16, #tpu.memory_space<vmem>>, vector<1x16x64xbf16>
    %4 = vector.shape_cast %3 : vector<1x16x64xbf16> to vector<16x64xbf16>
    %c24 = arith.constant 24 : index
    %c0_6 = arith.constant 0 : index
    %5 = vector.load %arg10[%c24, %c0_6] : memref<40x64xbf16, #tpu.memory_space<vmem>>, vector<16x64xbf16>
    tpu.vector_store %arg10[%c24, %c0_6], %4 {strides = array<i32>} : memref<40x64xbf16, #tpu.memory_space<vmem>>, vector<16x64xbf16>,
    %cst = arith.constant 0.000000e+00 : bf16
    %6 = vector.broadcast %cst : bf16 to vector<8x64xbf16>
    %c16 = arith.constant 16 : index
    %c0_7 = arith.constant 0 : index
    %7 = vector.load %arg10[%c16, %c0_7] : memref<40x64xbf16, #tpu.memory_space<vmem>>, vector<8x64xbf16>
    tpu.vector_store %arg10[%c16, %c0_7], %6 {strides = array<i32>} : memref<40x64xbf16, #tpu.memory_space<vmem>>, vector<8x64xbf16>,
    %c0_8 = arith.constant 0 : index
    %c0_9 = arith.constant 0 : index
    %8 = vector.load %arg10[%c0_8, %c0_9] : memref<40x64xbf16, #tpu.memory_space<vmem>>, vector<40x64xbf16>
    %c1_10 = arith.constant 1 : index
    %c0_11 = arith.constant 0 : index
    %c0_12 = arith.constant 0 : index
    %9 = vector.load %arg2[%c1_10, %c0_11, %c0_12] : memref<3x64x128xbf16, #tpu.memory_space<vmem>>, vector<1x64x128xbf16>
    %10 = vector.shape_cast %9 : vector<1x64x128xbf16> to vector<64x128xbf16>
    %cst_13 = arith.constant dense<0.000000e+00> : vector<40x128xf32>
    %11 = tpu.matmul %8, %10, %cst_13 {dimension_numbers = #tpu.dot_dimension_numbers<[1], [0], [0], [1], [0, 0, 1, 1], [], []>} : vector<40x64xbf16>, vector<64x128xbf16>, vector<40x128xf32> -> vector<40x128xf32>
    %c0_14 = arith.constant 0 : index
    %c0_15 = arith.constant 0 : index
    %12 = vector.load %arg11[%c0_14, %c0_15] : memref<40x128xf32, #tpu.memory_space<vmem>>, vector<40x128xf32>
    tpu.vector_store %arg11[%c0_14, %c0_15], %11 {strides = array<i32>} : memref<40x128xf32, #tpu.memory_space<vmem>>, vector<40x128xf32>,
    %c0_16 = arith.constant 0 : index
    %c0_17 = arith.constant 0 : index
    %c0_18 = arith.constant 0 : index
    %13 = vector.load %arg2[%c0_16, %c0_17, %c0_18] : memref<3x64x128xbf16, #tpu.memory_space<vmem>>, vector<1x64x128xbf16>
    %14 = vector.shape_cast %13 : vector<1x64x128xbf16> to vector<64x128xbf16>
    %cst_19 = arith.constant dense<0.000000e+00> : vector<40x128xf32>
    %15 = tpu.matmul %8, %14, %cst_19 {dimension_numbers = #tpu.dot_dimension_numbers<[1], [0], [0], [1], [0, 0, 1, 1], [], []>} : vector<40x64xbf16>, vector<64x128xbf16>, vector<40x128xf32> -> vector<40x128xf32>
    %c1_20 = arith.constant 1 : index
    %c0_21 = arith.constant 0 : index
    %16 = vector.load %arg11[%c1_20, %c0_21] : memref<40x128xf32, #tpu.memory_space<vmem>>, vector<39x128xf32>
    %17 = vector.extract_strided_slice %15 {offsets = [0, 0], sizes = [39, 128], strides = [1, 1]} : vector<40x128xf32> to vector<39x128xf32>
    %18 = arith.addf %16, %17 : vector<39x128xf32>
    %c1_22 = arith.constant 1 : index
    %c0_23 = arith.constant 0 : index
    %19 = vector.load %arg11[%c1_22, %c0_23] : memref<40x128xf32, #tpu.memory_space<vmem>>, vector<39x128xf32>
    tpu.vector_store %arg11[%c1_22, %c0_23], %18 {strides = array<i32>} : memref<40x128xf32, #tpu.memory_space<vmem>>, vector<39x128xf32>,
    %c2 = arith.constant 2 : index
    %c0_24 = arith.constant 0 : index
    %c0_25 = arith.constant 0 : index
    %20 = vector.load %arg2[%c2, %c0_24, %c0_25] : memref<3x64x128xbf16, #tpu.memory_space<vmem>>, vector<1x64x128xbf16>
    %21 = vector.shape_cast %20 : vector<1x64x128xbf16> to vector<64x128xbf16>
    %cst_26 = arith.constant dense<0.000000e+00> : vector<40x128xf32>
    %22 = tpu.matmul %8, %21, %cst_26 {dimension_numbers = #tpu.dot_dimension_numbers<[1], [0], [0], [1], [0, 0, 1, 1], [], []>} : vector<40x64xbf16>, vector<64x128xbf16>, vector<40x128xf32> -> vector<40x128xf32>
    %c0_27 = arith.constant 0 : index
    %c0_28 = arith.constant 0 : index
    %23 = vector.load %arg11[%c0_27, %c0_28] : memref<40x128xf32, #tpu.memory_space<vmem>>, vector<39x128xf32>
    %24 = vector.extract_strided_slice %22 {offsets = [1, 0], sizes = [39, 128], strides = [1, 1]} : vector<40x128xf32> to vector<39x128xf32>
    %25 = arith.addf %23, %24 : vector<39x128xf32>
    %c0_29 = arith.constant 0 : index
    %c0_30 = arith.constant 0 : index
    %26 = vector.load %arg11[%c0_29, %c0_30] : memref<40x128xf32, #tpu.memory_space<vmem>>, vector<39x128xf32>
    tpu.vector_store %arg11[%c0_29, %c0_30], %25 {strides = array<i32>} : memref<40x128xf32, #tpu.memory_space<vmem>>, vector<39x128xf32>,
    %c0_31 = arith.constant 0 : index
    %c0_32 = arith.constant 0 : index
    %27 = vector.load %arg11[%c0_31, %c0_32] : memref<40x128xf32, #tpu.memory_space<vmem>>, vector<40x128xf32>
    %c0_33 = arith.constant 0 : index
    %c0_34 = arith.constant 0 : index
    %28 = vector.load %arg4[%c0_33, %c0_34] : memref<1x128xf32, #tpu.memory_space<vmem>>, vector<1x128xf32>
    %29 = vector.broadcast %28 : vector<1x128xf32> to vector<40x128xf32>
    %30 = arith.mulf %27, %29 : vector<40x128xf32>
    %c0_35 = arith.constant 0 : index
    %c0_36 = arith.constant 0 : index
    %31 = vector.load %arg5[%c0_35, %c0_36] : memref<1x128xf32, #tpu.memory_space<vmem>>, vector<1x128xf32>
    %32 = vector.broadcast %31 : vector<1x128xf32> to vector<40x128xf32>
    %33 = arith.addf %30, %32 : vector<40x128xf32>
    %cst_37 = arith.constant 0.000000e+00 : f32
    %34 = vector.broadcast %cst_37 : f32 to vector<40x128xf32>
    %35 = arith.maximumf %33, %34 : vector<40x128xf32>
    %c0_38 = arith.constant 0 : index
    %c0_39 = arith.constant 0 : index
    %36 = vector.load %arg8[%c0_38, %c0_39] : memref<40x1xf32, #tpu.memory_space<vmem>>, vector<40x1xf32>
    %37 = vector.broadcast %36 : vector<40x1xf32> to vector<40x128xf32>
    %38 = arith.mulf %35, %37 : vector<40x128xf32>
    %39 = arith.truncf %38 : vector<40x128xf32> to vector<40x128xbf16>
    %c1_40 = arith.constant 1 : index
    %c0_41 = arith.constant 0 : index
    %c0_42 = arith.constant 0 : index
    %40 = vector.load %arg3[%c1_40, %c0_41, %c0_42] : memref<3x128x128xbf16, #tpu.memory_space<vmem>>, vector<1x128x128xbf16>
    %41 = vector.shape_cast %40 : vector<1x128x128xbf16> to vector<128x128xbf16>
    %cst_43 = arith.constant dense<0.000000e+00> : vector<40x128xf32>
    %42 = tpu.matmul %39, %41, %cst_43 {dimension_numbers = #tpu.dot_dimension_numbers<[1], [0], [0], [1], [0, 0, 1, 1], [], []>} : vector<40x128xbf16>, vector<128x128xbf16>, vector<40x128xf32> -> vector<40x128xf32>
    %c0_44 = arith.constant 0 : index
    %c0_45 = arith.constant 0 : index
    %43 = vector.load %arg11[%c0_44, %c0_45] : memref<40x128xf32, #tpu.memory_space<vmem>>, vector<40x128xf32>
    tpu.vector_store %arg11[%c0_44, %c0_45], %42 {strides = array<i32>} : memref<40x128xf32, #tpu.memory_space<vmem>>, vector<40x128xf32>,
    %c0_46 = arith.constant 0 : index
    %c0_47 = arith.constant 0 : index
    %c0_48 = arith.constant 0 : index
    %44 = vector.load %arg3[%c0_46, %c0_47, %c0_48] : memref<3x128x128xbf16, #tpu.memory_space<vmem>>, vector<1x128x128xbf16>
    %45 = vector.shape_cast %44 : vector<1x128x128xbf16> to vector<128x128xbf16>
    %cst_49 = arith.constant dense<0.000000e+00> : vector<40x128xf32>
    %46 = tpu.matmul %39, %45, %cst_49 {dimension_numbers = #tpu.dot_dimension_numbers<[1], [0], [0], [1], [0, 0, 1, 1], [], []>} : vector<40x128xbf16>, vector<128x128xbf16>, vector<40x128xf32> -> vector<40x128xf32>
    %c1_50 = arith.constant 1 : index
    %c0_51 = arith.constant 0 : index
    %47 = vector.load %arg11[%c1_50, %c0_51] : memref<40x128xf32, #tpu.memory_space<vmem>>, vector<39x128xf32>
    %48 = vector.extract_strided_slice %46 {offsets = [0, 0], sizes = [39, 128], strides = [1, 1]} : vector<40x128xf32> to vector<39x128xf32>
    %49 = arith.addf %47, %48 : vector<39x128xf32>
    %c1_52 = arith.constant 1 : index
    %c0_53 = arith.constant 0 : index
    %50 = vector.load %arg11[%c1_52, %c0_53] : memref<40x128xf32, #tpu.memory_space<vmem>>, vector<39x128xf32>
    tpu.vector_store %arg11[%c1_52, %c0_53], %49 {strides = array<i32>} : memref<40x128xf32, #tpu.memory_space<vmem>>, vector<39x128xf32>,
    %c2_54 = arith.constant 2 : index
    %c0_55 = arith.constant 0 : index
    %c0_56 = arith.constant 0 : index
    %51 = vector.load %arg3[%c2_54, %c0_55, %c0_56] : memref<3x128x128xbf16, #tpu.memory_space<vmem>>, vector<1x128x128xbf16>
    %52 = vector.shape_cast %51 : vector<1x128x128xbf16> to vector<128x128xbf16>
    %cst_57 = arith.constant dense<0.000000e+00> : vector<40x128xf32>
    %53 = tpu.matmul %39, %52, %cst_57 {dimension_numbers = #tpu.dot_dimension_numbers<[1], [0], [0], [1], [0, 0, 1, 1], [], []>} : vector<40x128xbf16>, vector<128x128xbf16>, vector<40x128xf32> -> vector<40x128xf32>
    %c0_58 = arith.constant 0 : index
    %c0_59 = arith.constant 0 : index
    %54 = vector.load %arg11[%c0_58, %c0_59] : memref<40x128xf32, #tpu.memory_space<vmem>>, vector<39x128xf32>
    %55 = vector.extract_strided_slice %53 {offsets = [1, 0], sizes = [39, 128], strides = [1, 1]} : vector<40x128xf32> to vector<39x128xf32>
    %56 = arith.addf %54, %55 : vector<39x128xf32>
    %c0_60 = arith.constant 0 : index
    %c0_61 = arith.constant 0 : index
    %57 = vector.load %arg11[%c0_60, %c0_61] : memref<40x128xf32, #tpu.memory_space<vmem>>, vector<39x128xf32>
    tpu.vector_store %arg11[%c0_60, %c0_61], %56 {strides = array<i32>} : memref<40x128xf32, #tpu.memory_space<vmem>>, vector<39x128xf32>,
    %c0_62 = arith.constant 0 : index
    %c0_63 = arith.constant 0 : index
    %58 = vector.load %arg11[%c0_62, %c0_63] : memref<40x128xf32, #tpu.memory_space<vmem>>, vector<40x128xf32>
    %c0_64 = arith.constant 0 : index
    %c0_65 = arith.constant 0 : index
    %59 = vector.load %arg6[%c0_64, %c0_65] : memref<1x128xf32, #tpu.memory_space<vmem>>, vector<1x128xf32>
    %60 = vector.broadcast %59 : vector<1x128xf32> to vector<40x128xf32>
    %61 = arith.mulf %58, %60 : vector<40x128xf32>
    %c0_66 = arith.constant 0 : index
    %c0_67 = arith.constant 0 : index
    %62 = vector.load %arg7[%c0_66, %c0_67] : memref<1x128xf32, #tpu.memory_space<vmem>>, vector<1x128xf32>
    %63 = vector.broadcast %62 : vector<1x128xf32> to vector<40x128xf32>
    %64 = arith.addf %61, %63 : vector<40x128xf32>
    %cst_68 = arith.constant 0.000000e+00 : f32
    %65 = vector.broadcast %cst_68 : f32 to vector<40x128xf32>
    %66 = arith.maximumf %64, %65 : vector<40x128xf32>
    %67 = vector.extract_strided_slice %66 {offsets = [0, 0], sizes = [16, 128], strides = [1, 1]} : vector<40x128xf32> to vector<16x128xf32>
    %c0_69 = arith.constant 0 : index
    %c0_70 = arith.constant 0 : index
    %c0_71 = arith.constant 0 : index
    %68 = vector.load %arg9[%c0_69, %c0_70, %c0_71] : memref<2x16x128xf32, #tpu.memory_space<vmem>>, vector<1x16x128xf32>
    %69 = vector.shape_cast %68 : vector<1x16x128xf32> to vector<16x128xf32>
    %70 = vector.shape_cast %67 : vector<16x128xf32> to vector<1x16x128xf32>
    tpu.vector_store %arg9[%c0_69, %c0_70, %c0_71], %70 {strides = array<i32>} : memref<2x16x128xf32, #tpu.memory_space<vmem>>, vector<1x16x128xf32>,
    %71 = vector.extract_strided_slice %66 {offsets = [24, 0], sizes = [16, 128], strides = [1, 1]} : vector<40x128xf32> to vector<16x128xf32>
    %c1_72 = arith.constant 1 : index
    %c0_73 = arith.constant 0 : index
    %c0_74 = arith.constant 0 : index
    %72 = vector.load %arg9[%c1_72, %c0_73, %c0_74] : memref<2x16x128xf32, #tpu.memory_space<vmem>>, vector<1x16x128xf32>
    %73 = vector.shape_cast %72 : vector<1x16x128xf32> to vector<16x128xf32>
    %74 = vector.shape_cast %71 : vector<16x128xf32> to vector<1x16x128xf32>
    tpu.vector_store %arg9[%c1_72, %c0_73, %c0_74], %74 {strides = array<i32>} : memref<2x16x128xf32, #tpu.memory_space<vmem>>, vector<1x16x128xf32>,
    return
  }
  func.func @transform_0(%arg0: i32) -> (i32, i32, i32) {
    %c0_i32 = arith.constant 0 : i32
    %c0_i32_0 = arith.constant 0 : i32
    %c0_i32_1 = arith.constant 0 : i32
    return %arg0, %c0_i32, %c0_i32_0 : i32, i32, i32
  }
  func.func @transform_1(%arg0: i32) -> (i32, i32, i32) {
    %c0_i32 = arith.constant 0 : i32
    %c0_i32_0 = arith.constant 0 : i32
    %c0_i32_1 = arith.constant 0 : i32
    %c0_i32_2 = arith.constant 0 : i32
    return %c0_i32, %c0_i32_0, %c0_i32_1 : i32, i32, i32
  }
  func.func @transform_2(%arg0: i32) -> (i32, i32, i32) {
    %c0_i32 = arith.constant 0 : i32
    %c0_i32_0 = arith.constant 0 : i32
    %c0_i32_1 = arith.constant 0 : i32
    %c0_i32_2 = arith.constant 0 : i32
    return %c0_i32, %c0_i32_0, %c0_i32_1 : i32, i32, i32
  }
  func.func @transform_3(%arg0: i32) -> (i32, i32) {
    %c0_i32 = arith.constant 0 : i32
    %c0_i32_0 = arith.constant 0 : i32
    %c0_i32_1 = arith.constant 0 : i32
    return %c0_i32, %c0_i32_0 : i32, i32
  }
  func.func @transform_4(%arg0: i32) -> (i32, i32) {
    %c0_i32 = arith.constant 0 : i32
    %c0_i32_0 = arith.constant 0 : i32
    %c0_i32_1 = arith.constant 0 : i32
    return %c0_i32, %c0_i32_0 : i32, i32
  }
  func.func @transform_5(%arg0: i32) -> (i32, i32) {
    %c0_i32 = arith.constant 0 : i32
    %c0_i32_0 = arith.constant 0 : i32
    %c0_i32_1 = arith.constant 0 : i32
    return %c0_i32, %c0_i32_0 : i32, i32
  }
  func.func @transform_6(%arg0: i32) -> (i32, i32) {
    %c0_i32 = arith.constant 0 : i32
    %c0_i32_0 = arith.constant 0 : i32
    %c0_i32_1 = arith.constant 0 : i32
    return %c0_i32, %c0_i32_0 : i32, i32
  }
  func.func @transform_7(%arg0: i32) -> (i32, i32) {
    %c0_i32 = arith.constant 0 : i32
    %c0_i32_0 = arith.constant 0 : i32
    %c0_i32_1 = arith.constant 0 : i32
    return %c0_i32, %c0_i32_0 : i32, i32
  }
  func.func @transform_8(%arg0: i32) -> (i32, i32, i32) {
    %c0_i32 = arith.constant 0 : i32
    %c0_i32_0 = arith.constant 0 : i32
    %c0_i32_1 = arith.constant 0 : i32
    return %arg0, %c0_i32, %c0_i32_0 : i32, i32, i32
  }
}

</mosaic_0001>

<bundles_post_ra>
// kernel: unet_conv_forward.1
= control target key start
LH: loop header
LB: loop body
LE: loop exit
PB: predicated region body
PF: predicated region fallthrough
CT: control target
= control target key end

     0   :  { %vm32_vm0 = vcmask 519168   ;;  %v974_v1 = vmov 0   ;;  %vm92_vm1 = vcmask 523264   ;;  %vm266_vm2 = vcmask 1046528   ;;  %s1201_s1 = inlined_call_operand.vmem [shape: bf16[3,64,128], index: 1, kind: input, shape index: {}]   ;;  %s1202_s0 = inlined_call_operand.vmem [shape: bf16[2,16,64], index: 0, kind: input, shape index: {}]   ;;  %s1203_s7 = inlined_call_operand.vmem [shape: f32[40,1], index: 7, kind: input, shape index: {}]   ;;  %s1204_s3 = inlined_call_operand.vmem [shape: f32[1,128], index: 3, kind: input, shape index: {}]   ;;  %s1205_s4 = inlined_call_operand.vmem [shape: f32[1,128], index: 4, kind: input, shape index: {}]   ;;  %s1206_s2 = inlined_call_operand.vmem [shape: bf16[3,128,128], index: 2, kind: input, shape index: {}]   ;;  %s1207_s5 = inlined_call_operand.vmem [shape: f32[1,128], index: 5, kind: input, shape index: {}]   ;;  %s1208_s6 = inlined_call_operand.vmem [shape: f32[1,128], index: 6, kind: input, shape index: {}]   ;;  %s1209_s8 = inlined_call_operand.vmem [shape: f32[2,16,128], index: 8, kind: output, shape index: {}]  }
   0x1   :  { %v925_v0 = vld [vmem:[%s1201_s1 + $0x38] sm:$0xff]  ;;  %40 = vst.msk [vmem:[#allocation2 + $0x8] sm:$0xf] %vm32_vm0, %v974_v1  ;;  %967 = vset.pattern.permute.xlu0 %v974_v1  ;;  %968 = vset.pattern.permute.xlu1 %v974_v1  ;;  %v924_v2 = vld [vmem:[%s1201_s1 + $0x30] sm:$0xff]  ;;  %v30_v4 = vld [vmem:[%s1202_s0] sm:$0xf] }
   0x2   :  { %v929_v3 = vld [vmem:[%s1201_s1 + $0x18] sm:$0xff]  ;;  %969 = vset.pattern.permute.xlu2 %v974_v1  ;;  %106 = vmatpush.bf16.msra.mxu0 %v925_v0  ;;  %v31_v5 = vld [vmem:[%s1202_s0 + $0x4] sm:$0xf]  ;;  %v708_v6 = vld [vmem:[%s1202_s0 + $0xc] sm:$0xf] }
   0x3   :  { %958 = vmatpush.bf16.msra.mxu2 %v925_v0  ;;  %166 = vmatpush.bf16.msra.mxu1 %v929_v3  ;;  %v928_v7 = vld [vmem:[%s1201_s1 + $0x10] sm:$0xff]  ;;  %33 = vst.msk [vmem:[#allocation2] sm:$0xf] %vm32_vm0, %v30_v4  ;;  %v707_v8 = vld [vmem:[%s1202_s0 + $0x8] sm:$0xf]  ;;  %v922_v11 = vld [vmem:[%s1201_s1 + $0x20] sm:$0xff] }
   0x4   :  { %34 = vst.msk [vmem:[#allocation2 + $0x4] sm:$0xf] %vm32_vm0, %v31_v5  ;;  %v923_v9 = vld [vmem:[%s1201_s1 + $0x28] sm:$0xff]  ;;  %v926_v12 = vld [vmem:[%s1201_s1] sm:$0xff]  ;;  %v933_v17 = vld [vmem:[%s1201_s1 + $0x58] sm:$0xff] }
   0x5   :  { %39 = vst.msk [vmem:[#allocation2 + $0x10] sm:$0xf] %vm32_vm0, %v708_v6  ;;  %v927_v10 = vld [vmem:[%s1201_s1 + $0x8] sm:$0xff]  ;;  %v932_v18 = vld [vmem:[%s1201_s1 + $0x50] sm:$0xff]  ;;  %v930_v21 = vld [vmem:[%s1201_s1 + $0x40] sm:$0xff] }
   0x6   :  { %107 = vmatpush.bf16.msra.mxu0 %v924_v2  ;;  %38 = vst.msk [vmem:[#allocation2 + $0xc] sm:$0xf] %vm32_vm0, %v707_v8  ;;  %v931_v20 = vld [vmem:[%s1201_s1 + $0x48] sm:$0xff]  ;;  %v319_v22 = vld [vmem:[%s1203_s7] sm:$0xff]  ;;  %v321_v23 = vld [vmem:[%s1203_s7 + $0x10] sm:$0xff] }
   0x7   :  { %959 = vmatpush.bf16.msra.mxu2 %v924_v2  ;;  %167 = vmatpush.bf16.msra.mxu1 %v928_v7  ;;  %v320_v24 = vld [vmem:[%s1203_s7 + $0x8] sm:$0xff]  ;;  %v323_v25 = vld [vmem:[%s1203_s7 + $0x20] sm:$0xff]  ;;  %v322_v26 = vld [vmem:[%s1203_s7 + $0x18] sm:$0xff] }
   0x8   :  { %326 = vperm.xlu0 %967, %v319_v22   ;;  %336 = vperm.xlu1 %968, %v321_v23   ;;  %v941_v30 = vld [vmem:[%s1206_s2 + $0x78] sm:$0xff]  ;;  %v940_v35 = vld [vmem:[%s1206_s2 + $0x70] sm:$0xff]  ;;  %v939_v39 = vld [vmem:[%s1206_s2 + $0x68] sm:$0xff] }
   0x9   :  { %346 = vperm.xlu2 %969, %v323_v25   ;;  %v949_v31 = vld [vmem:[%s1206_s2 + $0x38] sm:$0xff]  ;;  %422 = vmatpush.bf16.msra.mxu3 %v941_v30  ;;  %v948_v36 = vld [vmem:[%s1206_s2 + $0x30] sm:$0xff]  ;;  %v947_v40 = vld [vmem:[%s1206_s2 + $0x28] sm:$0xff] }
   0xa   :  { %108 = vmatpush.bf16.msra.mxu0 %v923_v9  ;;  %v957_v32 = vld [vmem:[%s1206_s2 + $0xb8] sm:$0xff]  ;;  %v956_v37 = vld [vmem:[%s1206_s2 + $0xb0] sm:$0xff]  ;;  %v955_v41 = vld [vmem:[%s1206_s2 + $0xa8] sm:$0xff] }
   0xb   :  { %960 = vmatpush.bf16.msra.mxu2 %v923_v9  ;;  %168 = vmatpush.bf16.msra.mxu1 %v927_v10  ;;  %v920_v14 = vld [vmem:[#allocation2] sm:$0xff]  ;;  %v937_v52 = vld [vmem:[%s1206_s2 + $0x58] sm:$0xff]  ;;  %v936_v58 = vld [vmem:[%s1206_s2 + $0x50] sm:$0xff] }
   0xc   :  { %v45_v13 = vld [vmem:[#allocation2 + $0x10] sm:$0xf]  ;;  %v938_v45 = vld [vmem:[%s1206_s2 + $0x60] sm:$0xff]  ;;  %v945_v53 = vld [vmem:[%s1206_s2 + $0x18] sm:$0xff] }
   0xd   :  { %v64_v15 = vunpack.c.l.b16 %v45_v13  ;;  %v921_v19 = vld [vmem:[#allocation2 + $0x8] sm:$0xff]  ;;  %423 = vmatpush.bf16.msra.mxu3 %v940_v35  ;;  %v946_v46 = vld [vmem:[%s1206_s2 + $0x20] sm:$0xff]  ;;  %v953_v54 = vld [vmem:[%s1206_s2 + $0x98] sm:$0xff] }
   0xe   :  { %109 = vmatpush.bf16.msra.mxu0 %v922_v11  ;;  %v954_v47 = vld [vmem:[%s1206_s2 + $0xa0] sm:$0xff]  ;;  %v944_v59 = vld [vmem:[%s1206_s2 + $0x10] sm:$0xff]  ;;  %v935_v63 = vld [vmem:[%s1206_s2 + $0x48] sm:$0xff] }
   0xf   :  { %961 = vmatpush.bf16.msra.mxu2 %v922_v11  ;;  %v67_v16 = vpack.c.b16 %v64_v15, %v64_v15  ;;  %169 = vmatpush.bf16.msra.mxu1 %v926_v12  ;;  %v952_v60 = vld [vmem:[%s1206_s2 + $0x90] sm:$0xff]  ;;  %v943_v0 = vld [vmem:[%s1206_s2 + $0x8] sm:$0xff]  ;;  %v934_v6 = vld [vmem:[%s1206_s2 + $0x40] sm:$0xff] }
  0x10   :  { %331 = vperm.xlu0 %967, %v320_v24   ;;  %341 = vperm.xlu1 %968, %v322_v26   ;;  %v951_v1 = vld [vmem:[%s1206_s2 + $0x88] sm:$0xff]  ;;  %v950_v8 = vld [vmem:[%s1206_s2 + $0x80] sm:$0xff] }
  0x11   :  { %741 = vmatmul.msk.bf16.vlgmr.msra.gmra.mxu0 %vm92_vm1, %v920_v14  ;;  %424 = vmatpush.bf16.msra.mxu3 %v939_v39 }
  0x12   :  { %743 = vmatmul.msk.bf16.vlgmr.msra.gmra.mxu2 %vm92_vm1, %v67_v16  ;;  %760 = vmatmul.msk.bf16.vlgmr.msra.gmra.mxu1 %vm92_vm1, %v920_v14 }
  0x13   :  { %962 = vmatpush.bf16.msrb.mxu2 %v929_v3  ;;  %514 = vmatpush.bf16.msrb.mxu0 %v949_v31 }
  0x14   :  { %617 = vmatpush.bf16.msrb.mxu1 %v957_v32 }
  0x15   :  { %425 = vmatpush.bf16.msra.mxu3 %v938_v45 }
  0x17   :  { %963 = vmatpush.bf16.msrb.mxu2 %v928_v7  ;;  %515 = vmatpush.bf16.msrb.mxu0 %v948_v36  ;;  %v942_v7 = vld [vmem:[%s1206_s2] sm:$0xff] }
  0x18   :  { %618 = vmatpush.bf16.msrb.mxu1 %v956_v37 }
  0x19   :  { %426 = vmatpush.bf16.msra.mxu3 %v937_v52 }
  0x1b   :  { %964 = vmatpush.bf16.msrb.mxu2 %v927_v10  ;;  %516 = vmatpush.bf16.msrb.mxu0 %v947_v40 }
  0x1c   :  { %619 = vmatpush.bf16.msrb.mxu1 %v955_v41 }
  0x1d   :  { %427 = vmatpush.bf16.msra.mxu3 %v936_v58 }
  0x1f   :  { %965 = vmatpush.bf16.msrb.mxu2 %v926_v12  ;;  %517 = vmatpush.bf16.msrb.mxu0 %v946_v46 }
  0x20   :  { %620 = vmatpush.bf16.msrb.mxu1 %v954_v47 }
  0x21   :  { %742 = vmatmul.msk.bf16.gmra.mxu0 %vm92_vm1, %v921_v19  ;;  %428 = vmatpush.bf16.msra.mxu3 %v935_v63 }
  0x22   :  { %762 = vmatmul.msk.bf16.vlgmr.msrb.gmra.mxu2 %vm92_vm1, %v67_v16  ;;  %761 = vmatmul.msk.bf16.gmra.mxu1 %vm92_vm1, %v921_v19 }
  0x23   :  { %237 = vmatpush.bf16.msra.mxu2 %v933_v17  ;;  %518 = vmatpush.bf16.msrb.mxu0 %v945_v53 }
  0x24   :  { %621 = vmatpush.bf16.msrb.mxu1 %v953_v54 }
  0x25   :  { %429 = vmatpush.bf16.msra.mxu3 %v934_v6 }
  0x27   :  { %238 = vmatpush.bf16.msra.mxu2 %v932_v18  ;;  %519 = vmatpush.bf16.msrb.mxu0 %v944_v59 }
  0x28   :  { %622 = vmatpush.bf16.msrb.mxu1 %v952_v60 }
  0x2b   :  { %239 = vmatpush.bf16.msra.mxu2 %v931_v20  ;;  %520 = vmatpush.bf16.msrb.mxu0 %v943_v0 }
  0x2c   :  { %623 = vmatpush.bf16.msrb.mxu1 %v951_v1 }
  0x2f   :  { %240 = vmatpush.bf16.msra.mxu2 %v930_v21  ;;  %521 = vmatpush.bf16.msrb.mxu0 %v942_v7 }
  0x30   :  { %624 = vmatpush.bf16.msrb.mxu1 %v950_v8 }
  0x32   :  { %787 = vmatmul.msk.bf16.vlgmr.msra.gmra.mxu2 %vm92_vm1, %v920_v14 }
  0x42   :  { %788 = vmatmul.msk.bf16.gmra.mxu2 %vm92_vm1, %v921_v19  ;;  %v971_v19 = vld [vmem:[%s1205_s4] ss:$0 sm:$0xff] }
  0x52   :  { %789 = vmatmul.msk.bf16.gmra.mxu2 %vm92_vm1, %v67_v16  ;;  %v970_v16 = vld [vmem:[%s1204_s3] ss:$0 sm:$0xff] }
  0x7a   :  { %v327_v21 = vpop.permute.xlu0 %326 }
  0x8e   :  { %v111_v27 = vpop.f32.mrf.mxu0 }
  0x8f   :  { %125 = vst [vmem:[#allocation3] sm:$0xff] %v111_v27  ;;  %v171_v28 = vpop.f32.mrf.mxu1 }
  0x95   :  { %v121_v29 = vpop.f32.mrf.mxu2 }
  0x96   :  { %129 = vst [vmem:[#allocation3 + $0x20] sm:$0xff] %v121_v29  ;;  %v113_v33 = vpop.f32.mrf.mxu0 }
  0x97   :  { %126 = vst [vmem:[#allocation3 + $0x8] sm:$0xff] %v113_v33  ;;  %v173_v34 = vpop.f32.mrf.mxu1 }
  0x9d   :  { %v123_v38 = vpop.f32.mrf.mxu2  ;;  %v189_v50 = vld [vmem:[#allocation3 + $0x21] sm:$0x7f] }
  0x9e   :  { %v185_v42 = vld [vmem:[#allocation3 + $0x1] sm:$0xff]  ;;  %v116_v43 = vpop.f32.mrf.mxu0 }
  0x9f   :  { %v190_v44 = vadd.f32 %v185_v42, %v171_v28  ;;  %127 = vst [vmem:[#allocation3 + $0x10] sm:$0xff] %v116_v43  ;;  %v176_v48 = vpop.f32.mrf.mxu1  ;;  %v337_v42 = vpop.permute.xlu1 %336 }
  0xa1   :  { %195 = vst [vmem:[#allocation3 + $0x1] sm:$0xff] %v190_v44 }
  0xa5   :  { %v181_v49 = vpop.f32.mrf.mxu2 }
  0xa6   :  { %v194_v51 = vadd.f32 %v189_v50, %v181_v49  ;;  %v186_v55 = vld [vmem:[#allocation3 + $0x9] sm:$0xff]  ;;  %v118_v56 = vpop.f32.mrf.mxu0 }
  0xa7   :  { %v191_v57 = vadd.f32 %v186_v55, %v173_v34  ;;  %128 = vst [vmem:[#allocation3 + $0x18] sm:$0xff] %v118_v56  ;;  %v178_v62 = vpop.f32.mrf.mxu1  ;;  %v332_v34 = vpop.permute.xlu0 %331 }
  0xa8   :  { %199 = vst [vmem:[#allocation3 + $0x21] sm:$0x7f] %v194_v51  ;;  %v256_v13 = vld [vmem:[#allocation3] sm:$0xff]  ;;  %v342_v54 = vpop.permute.xlu1 %341 }
  0xa9   :  { %196 = vst [vmem:[#allocation3 + $0x9] sm:$0xff] %v191_v57 }
  0xad   :  { %v183_v61 = vpop.f32.mrf.mxu2 }
  0xae   :  { %v187_v2 = vld [vmem:[#allocation3 + $0x11] sm:$0xff]  ;;  %v188_v3 = vld [vmem:[#allocation3 + $0x19] sm:$0xff] }
  0xaf   :  { %v192_v4 = vadd.f32 %v187_v2, %v176_v48  ;;  %v193_v5 = vadd.f32 %v188_v3, %v178_v62  ;;  %v347_v62 = vpop.permute.xlu2 %346 }
  0xb0   :  { %v257_v22 = vld [vmem:[#allocation3 + $0x8] sm:$0xff] }
  0xb1   :  { %197 = vst [vmem:[#allocation3 + $0x11] sm:$0xff] %v192_v4 }
  0xb2   :  { %198 = vst [vmem:[#allocation3 + $0x19] sm:$0xff] %v193_v5 }
  0xb5   :  { %v242_v9 = vpop.f32.mrf.mxu2 }
  0xb6   :  { %v267_v11 = vrot.slane %v242_v9, 1 }
  0xb8   :  { %v258_v32 = vld [vmem:[#allocation3 + $0x10] sm:$0xff] }
  0xb9   :  { %v260_v43 = vld [vmem:[#allocation3 + $0x20] sm:$0x7f]  ;;  %v259_v44 = vld [vmem:[#allocation3 + $0x18] sm:$0xff] }
  0xbd   :  { %v244_v10 = vpop.f32.mrf.mxu2 }
  0xbe   :  { %v268_v12 = vrot.slane %v244_v10, 1 }
  0xc0   :  { %v269_v14 = vsel %vm266_vm2, %v267_v11, %v268_v12 }
  0xc1   :  { %v281_v15 = vadd.f32 %v269_v14, %v256_v13 }
  0xc3   :  { %v300_v18 = vmul.f32 %v970_v16, %v281_v15 }
  0xc5   :  { %v247_v17 = vpop.f32.mrf.mxu2  ;;  %v309_v25 = vadd.f32 %v971_v19, %v300_v18  ;;  %v972_v18 = vld [vmem:[%s1207_s5] ss:$0 sm:$0xff] }
  0xc6   :  { %v270_v20 = vrot.slane %v247_v17, 1 }
  0xc7   :  { %v314_v27 = vmax.f32 %v309_v25, 0.0 }
  0xc8   :  { %v271_v23 = vsel %vm266_vm2, %v268_v12, %v270_v20 }
  0xc9   :  { %v282_v24 = vadd.f32 %v271_v23, %v257_v22  ;;  %v349_v35 = vmul.f32 %v327_v21, %v314_v27 }
  0xcb   :  { %v301_v26 = vmul.f32 %v970_v16, %v282_v24  ;;  %v973_v24 = vld [vmem:[%s1208_s6] ss:$0 sm:$0xff] }
  0xcd   :  { %v249_v28 = vpop.f32.mrf.mxu2  ;;  %v310_v29 = vadd.f32 %v971_v19, %v301_v26 }
  0xce   :  { %v272_v30 = vrot.slane %v249_v28, 1 }
  0xcf   :  { %v315_v31 = vmax.f32 %v310_v29, 0.0 }
  0xd0   :  { %v273_v33 = vsel %vm266_vm2, %v270_v20, %v272_v30 }
  0xd1   :  { %v283_v36 = vadd.f32 %v273_v33, %v258_v32  ;;  %v350_v37 = vmul.f32 %v332_v34, %v315_v31 }
  0xd3   :  { %v354_v38 = vpack.c.bf16 %v350_v37, %v349_v35  ;;  %v302_v40 = vmul.f32 %v970_v16, %v283_v36 }
  0xd5   :  { %v252_v39 = vpop.f32.mrf.mxu2  ;;  %430 = vmatmul.bf16.vlgmr.msra.gmra.mxu3 %v354_v38  ;;  %522 = vmatmul.bf16.vlgmr.msrb.gmra.mxu0 %v354_v38  ;;  %v311_v48 = vadd.f32 %v971_v19, %v302_v40 }
  0xd6   :  { %v274_v41 = vrot.slane %v252_v39, 1  ;;  %625 = vmatmul.bf16.vlgmr.msrb.gmra.mxu1 %v354_v38 }
  0xd7   :  { %v316_v50 = vmax.f32 %v311_v48, 0.0 }
  0xd8   :  { %v275_v45 = vsel %vm266_vm2, %v272_v30, %v274_v41  ;;  %v285_v46 = vadd.f32 %v274_v41, %v260_v43 }
  0xd9   :  { %v284_v47 = vadd.f32 %v275_v45, %v259_v44  ;;  %v351_v55 = vmul.f32 %v337_v42, %v316_v50 }
  0xda   :  { %290 = vst [vmem:[#allocation3 + $0x20] sm:$0x7f] %v285_v46 }
  0xdb   :  { %v303_v49 = vmul.f32 %v970_v16, %v284_v47 }
  0xdd   :  { %v254_v51 = vpop.f32.mrf.mxu2  ;;  %v312_v52 = vadd.f32 %v971_v19, %v303_v49 }
  0xdf   :  { %v317_v53 = vmax.f32 %v312_v52, 0.0 }
  0xe1   :  { %v352_v56 = vmul.f32 %v342_v54, %v317_v53  ;;  %v295_v57 = vld [vmem:[#allocation3 + $0x20] sm:$0xff] }
  0xe2   :  { %v304_v59 = vmul.f32 %v970_v16, %v295_v57 }
  0xe3   :  { %v355_v58 = vpack.c.bf16 %v352_v56, %v351_v55 }
  0xe4   :  { %v313_v60 = vadd.f32 %v971_v19, %v304_v59 }
  0xe5   :  { %435 = vmatmul.bf16.gmra.mxu3 %v355_v58  ;;  %527 = vmatmul.bf16.gmra.mxu0 %v355_v58 }
  0xe6   :  { %630 = vmatmul.bf16.gmra.mxu1 %v355_v58  ;;  %v318_v61 = vmax.f32 %v313_v60, 0.0 }
  0xe8   :  { %v353_v63 = vmul.f32 %v347_v62, %v318_v61 }
  0xea   :  { %v356_v0 = vpack.c.bf16 %v353_v63, %v353_v63 }
  0xf5   :  { %440 = vmatmul.bf16.gmra.mxu3 %v356_v0  ;;  %532 = vmatmul.bf16.gmra.mxu0 %v356_v0 }
  0xf6   :  { %635 = vmatmul.bf16.gmra.mxu1 %v356_v0 }
 0x152   :  { %v523_v1 = vpop.f32.mrf.mxu0 }
 0x153   :  { %v626_v2 = vpop.f32.mrf.mxu1 }
 0x154   :  { %v650_v15 = vrot.slane %v626_v2, 1 }
 0x158   :  { %v431_v3 = vpop.f32.mrf.mxu3 }
 0x159   :  { %445 = vst [vmem:[#allocation3] sm:$0xff] %v431_v3 }
 0x15a   :  { %v525_v4 = vpop.f32.mrf.mxu0 }
 0x15b   :  { %v628_v5 = vpop.f32.mrf.mxu1 }
 0x15c   :  { %v651_v14 = vrot.slane %v628_v5, 1 }
 0x15e   :  { %v652_v20 = vsel %vm266_vm2, %v650_v15, %v651_v14 }
 0x160   :  { %v433_v6 = vpop.f32.mrf.mxu3 }
 0x161   :  { %446 = vst [vmem:[#allocation3 + $0x8] sm:$0xff] %v433_v6 }
 0x162   :  { %v528_v7 = vpop.f32.mrf.mxu0 }
 0x163   :  { %v631_v8 = vpop.f32.mrf.mxu1 }
 0x164   :  { %v653_v27 = vrot.slane %v631_v8, 1 }
 0x166   :  { %v654_v33 = vsel %vm266_vm2, %v651_v14, %v653_v27 }
 0x168   :  { %v537_v9 = vld [vmem:[#allocation3 + $0x1] sm:$0xff]  ;;  %v436_v10 = vpop.f32.mrf.mxu3 }
 0x169   :  { %v542_v11 = vadd.f32 %v537_v9, %v523_v1  ;;  %447 = vst [vmem:[#allocation3 + $0x10] sm:$0xff] %v436_v10 }
 0x16a   :  { %v530_v12 = vpop.f32.mrf.mxu0 }
 0x16b   :  { %547 = vst [vmem:[#allocation3 + $0x1] sm:$0xff] %v542_v11  ;;  %v633_v13 = vpop.f32.mrf.mxu1 }
 0x16c   :  { %v655_v40 = vrot.slane %v633_v13, 1 }
 0x16e   :  { %v656_v47 = vsel %vm266_vm2, %v653_v27, %v655_v40 }
 0x170   :  { %v538_v16 = vld [vmem:[#allocation3 + $0x9] sm:$0xff]  ;;  %v438_v17 = vpop.f32.mrf.mxu3 }
 0x171   :  { %v543_v19 = vadd.f32 %v538_v16, %v525_v4  ;;  %448 = vst [vmem:[#allocation3 + $0x18] sm:$0xff] %v438_v17 }
 0x172   :  { %v640_v21 = vld [vmem:[#allocation3] sm:$0xff]  ;;  %v533_v22 = vpop.f32.mrf.mxu0 }
 0x173   :  { %v664_v23 = vadd.f32 %v652_v20, %v640_v21  ;;  %548 = vst [vmem:[#allocation3 + $0x9] sm:$0xff] %v543_v19  ;;  %v636_v25 = vpop.f32.mrf.mxu1 }
 0x174   :  { %v657_v50 = vrot.slane %v636_v25, 1 }
 0x175   :  { %669 = vst [vmem:[#allocation3] sm:$0xff] %v664_v23  ;;  %v682_v26 = vmul.f32 %v972_v18, %v664_v23 }
 0x176   :  { %v658_v51 = vsel %vm266_vm2, %v655_v40, %v657_v50 }
 0x177   :  { %v690_v28 = vadd.f32 %v973_v24, %v682_v26 }
 0x178   :  { %v539_v29 = vld [vmem:[#allocation3 + $0x11] sm:$0xff]  ;;  %v441_v30 = vpop.f32.mrf.mxu3 }
 0x179   :  { %v694_v31 = vmax.f32 %v690_v28, 0.0  ;;  %v544_v32 = vadd.f32 %v539_v29, %v528_v7  ;;  %449 = vst [vmem:[#allocation3 + $0x20] sm:$0xff] %v441_v30 }
 0x17a   :  { %v641_v34 = vld [vmem:[#allocation3 + $0x8] sm:$0xff]  ;;  %v535_v35 = vpop.f32.mrf.mxu0 }
 0x17b   :  { %698 = vst [vmem:[%s1209_s8] sm:$0xff] %v694_v31  ;;  %v665_v36 = vadd.f32 %v654_v33, %v641_v34  ;;  %v638_v37 = vpop.f32.mrf.mxu1 }
 0x17c   :  { %549 = vst [vmem:[#allocation3 + $0x11] sm:$0xff] %v544_v32 }
 0x17d   :  { %670 = vst [vmem:[#allocation3 + $0x8] sm:$0xff] %v665_v36  ;;  %v683_v38 = vmul.f32 %v972_v18, %v665_v36 }
 0x17f   :  { %v691_v39 = vadd.f32 %v973_v24, %v683_v38 }
 0x180   :  { %v540_v41 = vld [vmem:[#allocation3 + $0x19] sm:$0xff]  ;;  %v541_v42 = vld [vmem:[#allocation3 + $0x21] sm:$0x7f]  ;;  %v443_v43 = vpop.f32.mrf.mxu3 }
 0x181   :  { %v695_v44 = vmax.f32 %v691_v39, 0.0  ;;  %v545_v45 = vadd.f32 %v540_v41, %v530_v12  ;;  %v546_v46 = vadd.f32 %v541_v42, %v533_v22 }
 0x183   :  { %699 = vst [vmem:[%s1209_s8 + $0x8] sm:$0xff] %v695_v44  ;;  %v642_v48 = vld [vmem:[#allocation3 + $0x10] sm:$0xff] }
 0x184   :  { %v666_v49 = vadd.f32 %v656_v47, %v642_v48  ;;  %550 = vst [vmem:[#allocation3 + $0x19] sm:$0xff] %v545_v45 }
 0x185   :  { %551 = vst [vmem:[#allocation3 + $0x21] sm:$0x7f] %v546_v46 }
 0x186   :  { %671 = vst [vmem:[#allocation3 + $0x10] sm:$0xff] %v666_v49 }
 0x18b   :  { %v643_v52 = vld [vmem:[#allocation3 + $0x18] sm:$0xff] }
 0x18c   :  { %v644_v53 = vld [vmem:[#allocation3 + $0x20] sm:$0x7f]  ;;  %v667_v54 = vadd.f32 %v658_v51, %v643_v52 }
 0x18d   :  { %v668_v55 = vadd.f32 %v657_v50, %v644_v53 }
 0x18e   :  { %672 = vst [vmem:[#allocation3 + $0x18] sm:$0xff] %v667_v54  ;;  %v684_v56 = vmul.f32 %v972_v18, %v667_v54 }
 0x18f   :  { %673 = vst [vmem:[#allocation3 + $0x20] sm:$0x7f] %v668_v55 }
 0x190   :  { %v692_v57 = vadd.f32 %v973_v24, %v684_v56 }
 0x192   :  { %v696_v58 = vmax.f32 %v692_v57, 0.0 }
 0x194   :  { %918 = vst [vmem:[%s1209_s8 + $0x10] sm:$0xff] %v696_v58 }
 0x196   :  { %v677_v59 = vld [vmem:[#allocation3 + $0x20] sm:$0xff] }
 0x197   :  { %v685_v60 = vmul.f32 %v972_v18, %v677_v59 }
 0x199   :  { %v693_v61 = vadd.f32 %v973_v24, %v685_v60 }
 0x19b   :  { %v697_v62 = vmax.f32 %v693_v61, 0.0 }
 0x19d   :  { %919 = vst [vmem:[%s1209_s8 + $0x18] sm:$0xff] %v697_v62 }

</bundles_post_ra>
